<compile_context>
chip_gen: v7x
topology: tpu7x:2x2x1
jax: 0.10.0
libtpu: 0.0.40
codegen_flags: <defaults>
</compile_context>

<pallas_src>
import functools

import jax
import jax.numpy as jnp
from jax.experimental import pallas as pl
from jax.experimental.pallas import tpu as pltpu


# ------------------------------ GELU (exact) ---------------------------------

def _erf(x):
    # Abramowitz & Stegun 7.1.26 polynomial, |err| <= 1.5e-7 (well inside the
    # 1e-4 test tolerance).  Uses only exp / div / mul, which lower cleanly.
    p = 0.3275911
    a1, a2, a3, a4, a5 = (0.254829592, -0.284496736, 1.421413741,
                          -1.453152027, 1.061405429)
    ax = jnp.abs(x)
    # NOTE: pl.reciprocal(..., approx=True) would move this divide to the EUP
    # slot; kept exact here to preserve the 1e-4 parity check.
    t = 1.0 / (1.0 + p * ax)
    poly = ((((a5 * t + a4) * t + a3) * t + a2) * t + a1) * t
    e = 1.0 - poly * jnp.exp(-ax * ax)
    return jnp.where(x < 0.0, -e, e)


def _gelu_exact(x):
    # PyTorch nn.GELU() default is the exact erf form.
    return 0.5 * x * (1.0 + _erf(x * 0.7071067811865476))


# ------------------------------ Pallas kernel --------------------------------

def resblock_kernel(x_ref, m_ref, w1_ref, b1_ref, w2_ref, b2_ref, o_ref,
                    *, K, left):
    """One lane-dense batch group per grid step.

    x_ref  : (C, Nblk)      activations, batch folded into the lane dim
    m_ref  : (K, Nblk)      per-tap border masks (1.0 = valid time position)
    w*_ref : (C, K*C)       conv weights pre-reshaped for one deep MXU dot
    b*_ref : (C, 1)         biases
    o_ref  : (C, Nblk)      output block
    """
    masks = m_ref[...]                              # (K, Nblk), loaded once

    def shifted(h, s):
        # y[:, p] = h[:, p + s] for in-range p+s; zero-filled at the block
        # ends.  Cross-batch contamination at interior segment boundaries is
        # removed by the per-tap mask below.
        if s == 0:
            return h
        c = h.shape[0]
        z = jnp.zeros((c, abs(s)), h.dtype)
        if s > 0:
            return jnp.concatenate([h[:, s:], z], axis=1)
        return jnp.concatenate([z, h[:, :s]], axis=1)

    def conv_same(h, w_ref, b_ref):
        taps = []
        for k in range(K):                          # K tiny -> static unroll
            s = k - left
            v = shifted(h, s)
            if s != 0:
                v = v * masks[k:k + 1, :]           # zero invalid time slots
            taps.append(v)
        slab = jnp.concatenate(taps, axis=0)        # (K*C, Nblk) im2col slab
        acc = jnp.dot(w_ref[...], slab.astype(w_ref.dtype),
                      preferred_element_type=jnp.float32)
        return acc + b_ref[...]                     # (C, Nblk) + (C, 1)

    x = x_ref[...].astype(jnp.float32)
    h = conv_same(x, w1_ref, b1_ref)                # conv1: one MXU dot
    h = _gelu_exact(h)                              # GELU (exact, erf-based)
    h = conv_same(h, w2_ref, b2_ref)                # conv2: one MXU dot
    # Residual add: re-read x from VMEM (short live range).
    o_ref[...] = (h + x_ref[...].astype(jnp.float32)).astype(o_ref.dtype)


# --------------------------------- wrapper ------------------------------------

def _choose_block_batch(B, T, C, K):
    """How many batch elements to fold into one lane-dense grid block."""
    budget_elems = (8 * 1024 * 1024) // 4          # ~8 MiB of f32 activations
    best = None
    for bblk in range(1, B + 1):
        if B % bblk:
            continue
        lanes = bblk * T
        if bblk != B and lanes % 128:              # tiles lane-aligned or full
            continue
        if lanes * (K * C + 6 * C) > budget_elems:
            continue
        best = bblk
        if lanes >= 512:                           # dense enough; stop growing
            break
    # TODO(synk): for very large C*T, add T-tiling with K-1 halo columns.
    return best if best is not None else B


@functools.partial(jax.jit, static_argnames=("block_batch", "use_bf16"))
def simple_res_block(x, params, *, block_batch=None, use_bf16=False):
    """Equivalent of SimpleResBlock.forward. x: (B, C, T) float32."""
    B, C, T = x.shape
    K = params["w1"].shape[-1]
    left = (K - 1) // 2                            # PyTorch padding='same'

    Bblk = _choose_block_batch(B, T, C, K) if block_batch is None else block_batch
    assert B % Bblk == 0
    N, Nblk = B * T, Bblk * T

    # One-time weight relayout: (C_out, C_in, K) -> (C_out, K*C_in) so that
    # w2d[o, k*C + i] == w[o, i, k]; biases -> (C, 1).
    mxu_dtype = jnp.bfloat16 if use_bf16 else jnp.float32
    w1 = jnp.transpose(params["w1"], (0, 2, 1)).reshape(C, K * C).astype(mxu_dtype)
    w2 = jnp.transpose(params["w2"], (0, 2, 1)).reshape(C, K * C).astype(mxu_dtype)
    b1 = params["b1"].reshape(C, 1).astype(jnp.float32)
    b2 = params["b2"].reshape(C, 1).astype(jnp.float32)

    # Per-tap validity masks over one folded block: mask[k, b*T + t] = 1 iff
    # 0 <= t + (k - left) < T.  Computed once, reused by both convs.
    shifts = jnp.arange(K) - left
    tpos = jnp.arange(T)
    valid = ((tpos[None, :] + shifts[:, None]) >= 0) & \
            ((tpos[None, :] + shifts[:, None]) < T)                 # (K, T)
    masks = jnp.tile(valid.astype(jnp.float32), (1, Bblk))          # (K, Nblk)

    # Lane-dense layout: (B, C, T) -> (C, B*T).  Pure layout plumbing in XLA.
    x2 = jnp.transpose(x, (1, 0, 2)).reshape(C, N)

    kernel = functools.partial(resblock_kernel, K=K, left=left)
    out2 = pl.pallas_call(
        kernel,
        out_shape=jax.ShapeDtypeStruct((C, N), x.dtype),
        grid=(N // Nblk,),
        in_specs=[
            pl.BlockSpec((C, Nblk), lambda g: (0, g)),     # activations
            pl.BlockSpec((K, Nblk), lambda g: (0, 0)),     # border masks
            pl.BlockSpec((C, K * C), lambda g: (0, 0)),    # conv1 weight
            pl.BlockSpec((C, 1), lambda g: (0, 0)),        # conv1 bias
            pl.BlockSpec((C, K * C), lambda g: (0, 0)),    # conv2 weight
            pl.BlockSpec((C, 1), lambda g: (0, 0)),        # conv2 bias
        ],
        out_specs=pl.BlockSpec((C, Nblk), lambda g: (0, g)),
        compiler_params=pltpu.CompilerParams(
            dimension_semantics=("parallel",)),            # batch groups indep.
    )(x2, masks, w1, b1, w2, b2)

    return jnp.transpose(out2.reshape(C, B, T), (1, 0, 2))


# --------------------------- pure-JAX reference --------------------------------

def res_block_reference(x, params):
    def conv1d_same(h, w, b):
        K = w.shape[-1]
        left = (K - 1) // 2
        right = (K - 1) - left
        y = jax.lax.conv_general_dilated(
            h, w, window_strides=(1,), padding=[(left, right)],
            dimension_numbers=("NCH", "OIH", "NCH"))
        return y + b.reshape(1, -1, 1)

    h = conv1d_same(x, params["w1"], params["b1"])
    h = jax.nn.gelu(h, approximate=False)          # exact GELU (PyTorch default)
    h = conv1d_same(h, params["w2"], params["b2"])
    return h + x


# ------------------------------- param init ------------------------------------

def init_params(key, channels, kernel_size):
    """PyTorch Conv1d default init: U(-1/sqrt(fan_in), 1/sqrt(fan_in))."""
    fan_in = channels * kernel_size
    bound = 1.0 / float(fan_in) ** 0.5
    k1, k2, k3, k4 = jax.random.split(key, 4)
    return {
        "w1": jax.random.uniform(k1, (channels, channels, kernel_size),
                                 jnp.float32, -bound, bound),
        "b1": jax.random.uniform(k2, (channels,), jnp.float32, -bound, bound),
        "w2": jax.random.uniform(k3, (channels, channels, kernel_size),
                                 jnp.float32, -bound, bound),
        "b2": jax.random.uniform(k4, (channels,), jnp.float32, -bound, bound),
    }


# ----------------------------------- main ---------------------------------------

if __name__ == "__main__":
    batch, channels, time_len, kernel_size = 2, 8, 16, 5

    key = jax.random.PRNGKey(0)
    key, kx, kp = jax.random.split(key, 3)
    x = jax.random.normal(kx, (batch, channels, time_len), jnp.float32)
    params = init_params(kp, channels, kernel_size)

    out = simple_res_block(x, params)
    out = jax.block_until_ready(out)

    ref = res_block_reference(x, params)
    assert out.shape == (batch, channels, time_len), out.shape
    assert jnp.allclose(out, ref, rtol=1e-4, atol=1e-4), \
        float(jnp.max(jnp.abs(out - ref)))

    print("KERNEL_OK")
</pallas_src>

<mosaic_0001>
module attributes {stable_mosaic.version = 11 : i64} {
  func.func @resblock_kernel(%arg0: i32, %arg1: memref<8x32xf32, #tpu.memory_space<vmem>>, %arg2: memref<5x32xf32, #tpu.memory_space<vmem>>, %arg3: memref<8x40xf32, #tpu.memory_space<vmem>>, %arg4: memref<8x1xf32, #tpu.memory_space<vmem>>, %arg5: memref<8x40xf32, #tpu.memory_space<vmem>>, %arg6: memref<8x1xf32, #tpu.memory_space<vmem>>, %arg7: memref<8x32xf32, #tpu.memory_space<vmem>>) attributes {dimension_semantics = [#tpu.dimension_semantics<parallel>], iteration_bounds = array<i64: 1>, scalar_prefetch = 0 : i64, scratch_operands = 0 : i64, tpu.core_type = #tpu.core_type<tc>, window_params = [{transform_indices = @transform_0, window_bounds = array<i64: 8, 32>}, {pipeline_mode = #tpu.pipeline_mode<synchronous>, transform_indices = @transform_1, window_bounds = array<i64: 5, 32>}, {pipeline_mode = #tpu.pipeline_mode<synchronous>, transform_indices = @transform_2, window_bounds = array<i64: 8, 40>}, {pipeline_mode = #tpu.pipeline_mode<synchronous>, transform_indices = @transform_3, window_bounds = array<i64: 8, 1>}, {pipeline_mode = #tpu.pipeline_mode<synchronous>, transform_indices = @transform_4, window_bounds = array<i64: 8, 40>}, {pipeline_mode = #tpu.pipeline_mode<synchronous>, transform_indices = @transform_5, window_bounds = array<i64: 8, 1>}, {transform_indices = @transform_6, window_bounds = array<i64: 8, 32>}]} {
    %c0 = arith.constant 0 : index
    %c0_0 = arith.constant 0 : index
    %0 = vector.load %arg2[%c0, %c0_0] : memref<5x32xf32, #tpu.memory_space<vmem>>, vector<5x32xf32>
    %c0_1 = arith.constant 0 : index
    %c0_2 = arith.constant 0 : index
    %1 = vector.load %arg1[%c0_1, %c0_2] : memref<8x32xf32, #tpu.memory_space<vmem>>, vector<8x32xf32>
    %cst = arith.constant 0.000000e+00 : f32
    %2 = vector.broadcast %cst : f32 to vector<8x2xf32>
    %3 = vector.extract_strided_slice %1 {offsets = [0, 0], sizes = [8, 30], strides = [1, 1]} : vector<8x32xf32> to vector<8x30xf32>
    %4 = tpu.concatenate %2, %3 in 1 : vector<8x2xf32>, vector<8x30xf32> -> vector<8x32xf32>
    %5 = vector.extract_strided_slice %0 {offsets = [0, 0], sizes = [1, 32], strides = [1, 1]} : vector<5x32xf32> to vector<1x32xf32>
    %6 = vector.broadcast %5 : vector<1x32xf32> to vector<8x32xf32>
    %7 = arith.mulf %4, %6 : vector<8x32xf32>
    %cst_3 = arith.constant 0.000000e+00 : f32
    %8 = vector.broadcast %cst_3 : f32 to vector<8x1xf32>
    %9 = vector.extract_strided_slice %1 {offsets = [0, 0], sizes = [8, 31], strides = [1, 1]} : vector<8x32xf32> to vector<8x31xf32>
    %10 = tpu.concatenate %8, %9 in 1 : vector<8x1xf32>, vector<8x31xf32> -> vector<8x32xf32>
    %11 = vector.extract_strided_slice %0 {offsets = [1, 0], sizes = [1, 32], strides = [1, 1]} : vector<5x32xf32> to vector<1x32xf32>
    %12 = vector.broadcast %11 : vector<1x32xf32> to vector<8x32xf32>
    %13 = arith.mulf %10, %12 : vector<8x32xf32>
    %cst_4 = arith.constant 0.000000e+00 : f32
    %14 = vector.broadcast %cst_4 : f32 to vector<8x1xf32>
    %15 = vector.extract_strided_slice %1 {offsets = [0, 1], sizes = [8, 31], strides = [1, 1]} : vector<8x32xf32> to vector<8x31xf32>
    %16 = tpu.concatenate %15, %14 in 1 : vector<8x31xf32>, vector<8x1xf32> -> vector<8x32xf32>
    %17 = vector.extract_strided_slice %0 {offsets = [3, 0], sizes = [1, 32], strides = [1, 1]} : vector<5x32xf32> to vector<1x32xf32>
    %18 = vector.broadcast %17 : vector<1x32xf32> to vector<8x32xf32>
    %19 = arith.mulf %16, %18 : vector<8x32xf32>
    %cst_5 = arith.constant 0.000000e+00 : f32
    %20 = vector.broadcast %cst_5 : f32 to vector<8x2xf32>
    %21 = vector.extract_strided_slice %1 {offsets = [0, 2], sizes = [8, 30], strides = [1, 1]} : vector<8x32xf32> to vector<8x30xf32>
    %22 = tpu.concatenate %21, %20 in 1 : vector<8x30xf32>, vector<8x2xf32> -> vector<8x32xf32>
    %23 = vector.extract_strided_slice %0 {offsets = [4, 0], sizes = [1, 32], strides = [1, 1]} : vector<5x32xf32> to vector<1x32xf32>
    %24 = vector.broadcast %23 : vector<1x32xf32> to vector<8x32xf32>
    %25 = arith.mulf %22, %24 : vector<8x32xf32>
    %26 = tpu.concatenate %7, %13, %1, %19, %25 in 0 : vector<8x32xf32>, vector<8x32xf32>, vector<8x32xf32>, vector<8x32xf32>, vector<8x32xf32> -> vector<40x32xf32>
    %c0_6 = arith.constant 0 : index
    %c0_7 = arith.constant 0 : index
    %27 = vector.load %arg3[%c0_6, %c0_7] : memref<8x40xf32, #tpu.memory_space<vmem>>, vector<8x40xf32>
    %cst_8 = arith.constant dense<0.000000e+00> : vector<8x32xf32>
    %28 = tpu.matmul %27, %26, %cst_8 {dimension_numbers = #tpu.dot_dimension_numbers<[1], [0], [0], [1], [0, 0, 1, 1], [], []>} : vector<8x40xf32>, vector<40x32xf32>, vector<8x32xf32> -> vector<8x32xf32>
    %c0_9 = arith.constant 0 : index
    %c0_10 = arith.constant 0 : index
    %29 = vector.load %arg4[%c0_9, %c0_10] : memref<8x1xf32, #tpu.memory_space<vmem>>, vector<8x1xf32>
    %30 = vector.broadcast %29 : vector<8x1xf32> to vector<8x32xf32>
    %31 = arith.addf %28, %30 : vector<8x32xf32>
    %cst_11 = arith.constant 5.000000e-01 : f32
    %32 = vector.broadcast %cst_11 : f32 to vector<8x32xf32>
    %33 = arith.mulf %32, %31 : vector<8x32xf32>
    %cst_12 = arith.constant 0.707106769 : f32
    %34 = vector.broadcast %cst_12 : f32 to vector<8x32xf32>
    %35 = arith.mulf %31, %34 : vector<8x32xf32>
    %36 = math.absf %35 : vector<8x32xf32>
    %cst_13 = arith.constant 0.327591091 : f32
    %37 = vector.broadcast %cst_13 : f32 to vector<8x32xf32>
    %38 = arith.mulf %37, %36 : vector<8x32xf32>
    %cst_14 = arith.constant 1.000000e+00 : f32
    %39 = vector.broadcast %cst_14 : f32 to vector<8x32xf32>
    %40 = arith.addf %39, %38 : vector<8x32xf32>
    %cst_15 = arith.constant 1.000000e+00 : f32
    %41 = vector.broadcast %cst_15 : f32 to vector<8x32xf32>
    %42 = arith.divf %41, %40 : vector<8x32xf32>
    %cst_16 = arith.constant 1.06140542 : f32
    %43 = vector.broadcast %cst_16 : f32 to vector<8x32xf32>
    %44 = arith.mulf %43, %42 : vector<8x32xf32>
    %cst_17 = arith.constant -1.45315206 : f32
    %45 = vector.broadcast %cst_17 : f32 to vector<8x32xf32>
    %46 = arith.addf %44, %45 : vector<8x32xf32>
    %47 = arith.mulf %46, %42 : vector<8x32xf32>
    %cst_18 = arith.constant 1.42141378 : f32
    %48 = vector.broadcast %cst_18 : f32 to vector<8x32xf32>
    %49 = arith.addf %47, %48 : vector<8x32xf32>
    %50 = arith.mulf %49, %42 : vector<8x32xf32>
    %cst_19 = arith.constant -0.284496725 : f32
    %51 = vector.broadcast %cst_19 : f32 to vector<8x32xf32>
    %52 = arith.addf %50, %51 : vector<8x32xf32>
    %53 = arith.mulf %52, %42 : vector<8x32xf32>
    %cst_20 = arith.constant 0.254829586 : f32
    %54 = vector.broadcast %cst_20 : f32 to vector<8x32xf32>
    %55 = arith.addf %53, %54 : vector<8x32xf32>
    %56 = arith.mulf %55, %42 : vector<8x32xf32>
    %cst_21 = arith.constant 0.000000e+00 : f32
    %57 = vector.broadcast %cst_21 : f32 to vector<8x32xf32>
    %58 = arith.subf %57, %36 : vector<8x32xf32>
    %59 = arith.mulf %58, %36 : vector<8x32xf32>
    %60 = math.exp %59 : vector<8x32xf32>
    %61 = arith.mulf %56, %60 : vector<8x32xf32>
    %cst_22 = arith.constant 1.000000e+00 : f32
    %62 = vector.broadcast %cst_22 : f32 to vector<8x32xf32>
    %63 = arith.subf %62, %61 : vector<8x32xf32>
    %cst_23 = arith.constant 0.000000e+00 : f32
    %64 = vector.broadcast %cst_23 : f32 to vector<8x32xf32>
    %65 = arith.cmpf olt, %35, %64 : vector<8x32xf32>
    %cst_24 = arith.constant 0.000000e+00 : f32
    %66 = vector.broadcast %cst_24 : f32 to vector<8x32xf32>
    %67 = arith.subf %66, %63 : vector<8x32xf32>
    %68 = arith.select %65, %67, %63 : vector<8x32xi1>, vector<8x32xf32>
    %cst_25 = arith.constant 1.000000e+00 : f32
    %69 = vector.broadcast %cst_25 : f32 to vector<8x32xf32>
    %70 = arith.addf %69, %68 : vector<8x32xf32>
    %71 = arith.mulf %33, %70 : vector<8x32xf32>
    %cst_26 = arith.constant 0.000000e+00 : f32
    %72 = vector.broadcast %cst_26 : f32 to vector<8x2xf32>
    %73 = vector.extract_strided_slice %71 {offsets = [0, 0], sizes = [8, 30], strides = [1, 1]} : vector<8x32xf32> to vector<8x30xf32>
    %74 = tpu.concatenate %72, %73 in 1 : vector<8x2xf32>, vector<8x30xf32> -> vector<8x32xf32>
    %75 = vector.extract_strided_slice %0 {offsets = [0, 0], sizes = [1, 32], strides = [1, 1]} : vector<5x32xf32> to vector<1x32xf32>
    %76 = vector.broadcast %75 : vector<1x32xf32> to vector<8x32xf32>
    %77 = arith.mulf %74, %76 : vector<8x32xf32>
    %cst_27 = arith.constant 0.000000e+00 : f32
    %78 = vector.broadcast %cst_27 : f32 to vector<8x1xf32>
    %79 = vector.extract_strided_slice %71 {offsets = [0, 0], sizes = [8, 31], strides = [1, 1]} : vector<8x32xf32> to vector<8x31xf32>
    %80 = tpu.concatenate %78, %79 in 1 : vector<8x1xf32>, vector<8x31xf32> -> vector<8x32xf32>
    %81 = vector.extract_strided_slice %0 {offsets = [1, 0], sizes = [1, 32], strides = [1, 1]} : vector<5x32xf32> to vector<1x32xf32>
    %82 = vector.broadcast %81 : vector<1x32xf32> to vector<8x32xf32>
    %83 = arith.mulf %80, %82 : vector<8x32xf32>
    %cst_28 = arith.constant 0.000000e+00 : f32
    %84 = vector.broadcast %cst_28 : f32 to vector<8x1xf32>
    %85 = vector.extract_strided_slice %71 {offsets = [0, 1], sizes = [8, 31], strides = [1, 1]} : vector<8x32xf32> to vector<8x31xf32>
    %86 = tpu.concatenate %85, %84 in 1 : vector<8x31xf32>, vector<8x1xf32> -> vector<8x32xf32>
    %87 = vector.extract_strided_slice %0 {offsets = [3, 0], sizes = [1, 32], strides = [1, 1]} : vector<5x32xf32> to vector<1x32xf32>
    %88 = vector.broadcast %87 : vector<1x32xf32> to vector<8x32xf32>
    %89 = arith.mulf %86, %88 : vector<8x32xf32>
    %cst_29 = arith.constant 0.000000e+00 : f32
    %90 = vector.broadcast %cst_29 : f32 to vector<8x2xf32>
    %91 = vector.extract_strided_slice %71 {offsets = [0, 2], sizes = [8, 30], strides = [1, 1]} : vector<8x32xf32> to vector<8x30xf32>
    %92 = tpu.concatenate %91, %90 in 1 : vector<8x30xf32>, vector<8x2xf32> -> vector<8x32xf32>
    %93 = vector.extract_strided_slice %0 {offsets = [4, 0], sizes = [1, 32], strides = [1, 1]} : vector<5x32xf32> to vector<1x32xf32>
    %94 = vector.broadcast %93 : vector<1x32xf32> to vector<8x32xf32>
    %95 = arith.mulf %92, %94 : vector<8x32xf32>
    %96 = tpu.concatenate %77, %83, %71, %89, %95 in 0 : vector<8x32xf32>, vector<8x32xf32>, vector<8x32xf32>, vector<8x32xf32>, vector<8x32xf32> -> vector<40x32xf32>
    %c0_30 = arith.constant 0 : index
    %c0_31 = arith.constant 0 : index
    %97 = vector.load %arg5[%c0_30, %c0_31] : memref<8x40xf32, #tpu.memory_space<vmem>>, vector<8x40xf32>
    %cst_32 = arith.constant dense<0.000000e+00> : vector<8x32xf32>
    %98 = tpu.matmul %97, %96, %cst_32 {dimension_numbers = #tpu.dot_dimension_numbers<[1], [0], [0], [1], [0, 0, 1, 1], [], []>} : vector<8x40xf32>, vector<40x32xf32>, vector<8x32xf32> -> vector<8x32xf32>
    %c0_33 = arith.constant 0 : index
    %c0_34 = arith.constant 0 : index
    %99 = vector.load %arg6[%c0_33, %c0_34] : memref<8x1xf32, #tpu.memory_space<vmem>>, vector<8x1xf32>
    %100 = vector.broadcast %99 : vector<8x1xf32> to vector<8x32xf32>
    %101 = arith.addf %98, %100 : vector<8x32xf32>
    %c0_35 = arith.constant 0 : index
    %c0_36 = arith.constant 0 : index
    %102 = vector.load %arg1[%c0_35, %c0_36] : memref<8x32xf32, #tpu.memory_space<vmem>>, vector<8x32xf32>
    %103 = arith.addf %101, %102 : vector<8x32xf32>
    %c0_37 = arith.constant 0 : index
    %c0_38 = arith.constant 0 : index
    %104 = vector.load %arg7[%c0_37, %c0_38] : memref<8x32xf32, #tpu.memory_space<vmem>>, vector<8x32xf32>
    tpu.vector_store %arg7[%c0_37, %c0_38], %103 {strides = array<i32>} : memref<8x32xf32, #tpu.memory_space<vmem>>, vector<8x32xf32>,
    return
  }
  func.func @transform_0(%arg0: i32) -> (i32, i32) {
    %c0_i32 = arith.constant 0 : i32
    %c0_i32_0 = arith.constant 0 : i32
    return %c0_i32, %arg0 : i32, i32
  }
  func.func @transform_1(%arg0: i32) -> (i32, i32) {
    %c0_i32 = arith.constant 0 : i32
    %c0_i32_0 = arith.constant 0 : i32
    %c0_i32_1 = arith.constant 0 : i32
    return %c0_i32, %c0_i32_0 : i32, i32
  }
  func.func @transform_2(%arg0: i32) -> (i32, i32) {
    %c0_i32 = arith.constant 0 : i32
    %c0_i32_0 = arith.constant 0 : i32
    %c0_i32_1 = arith.constant 0 : i32
    return %c0_i32, %c0_i32_0 : i32, i32
  }
  func.func @transform_3(%arg0: i32) -> (i32, i32) {
    %c0_i32 = arith.constant 0 : i32
    %c0_i32_0 = arith.constant 0 : i32
    %c0_i32_1 = arith.constant 0 : i32
    return %c0_i32, %c0_i32_0 : i32, i32
  }
  func.func @transform_4(%arg0: i32) -> (i32, i32) {
    %c0_i32 = arith.constant 0 : i32
    %c0_i32_0 = arith.constant 0 : i32
    %c0_i32_1 = arith.constant 0 : i32
    return %c0_i32, %c0_i32_0 : i32, i32
  }
  func.func @transform_5(%arg0: i32) -> (i32, i32) {
    %c0_i32 = arith.constant 0 : i32
    %c0_i32_0 = arith.constant 0 : i32
    %c0_i32_1 = arith.constant 0 : i32
    return %c0_i32, %c0_i32_0 : i32, i32
  }
  func.func @transform_6(%arg0: i32) -> (i32, i32) {
    %c0_i32 = arith.constant 0 : i32
    %c0_i32_0 = arith.constant 0 : i32
    return %c0_i32, %arg0 : i32, i32
  }
}

</mosaic_0001>

<bundles_post_ra>
// kernel: tile.9
= control target key start
LH: loop header
LB: loop body
LE: loop exit
PB: predicated region body
PF: predicated region fallthrough
CT: control target
= control target key end

     0   :  { %vm28_vm0 = vcmask 1044484   ;;  %vm30_vm1 = vcmask 130048   ;;  %vm40_vm2 = vcmask 261248   ;;  %s82_s0 = inlined_call_operand.vmem [shape: f32[5,2,16], index: 0, kind: input, shape index: {}]   ;;  %s83_s1 = inlined_call_operand.vmem [shape: f32[5,32], index: 1, kind: output, shape index: {}]  }
   0x1   :  { %v45_v0 = vld [vmem:[%s82_s0 + $0x8] sm:$0x3]  ;;  %v46_v1 = vld [vmem:[%s82_s0 + $0x6] sm:$0x3]  ;;  %v47_v2 = vld [vmem:[%s82_s0 + $0x4] sm:$0x3] }
   0x2   :  { %8 = vst [vmem:[#allocation0 + $0x20] sm:$0x3] %v45_v0  ;;  %13 = vst [vmem:[#allocation0 + $0x18] sm:$0x3] %v46_v1  ;;  %v48_v3 = vld [vmem:[%s82_s0 + $0x2] sm:$0x3] }
   0x3   :  { %18 = vst [vmem:[#allocation0 + $0x10] sm:$0x3] %v47_v2  ;;  %v23_v4 = vld [vmem:[%s82_s0] sm:$0x3]  ;;  %22 = vst [vmem:[#allocation0 + $0x8] sm:$0x3] %v48_v3 }
   0x4   :  { %24 = vst [vmem:[#allocation0] sm:$0x3] %v23_v4  ;;  %s50_s0 = smov 16  }
   0x9   :  { %v27_v5 = vld [vmem:[#allocation0 + $0x1c] sm:$0x10]   ;;  %v35_v6 = vld [vmem:[#allocation0 + $0x1d] sm:$0x10]  }
   0xb   :  { %v25_v7 = vld [vmem:[#allocation0] ss:$8 sm:$0xf]   ;;  %v33_v8 = vld [vmem:[#allocation0 + $0x1] ss:$8 sm:$0xf]  }
   0xc   :  { %v29_v9 = vsel %vm28_vm0, %v27_v5, %v25_v7  ;;  %v37_v10 = vsel %vm28_vm0, %v35_v6, %v33_v8 }
   0xd   :  { %38 = vrot.lane.b32.xlu0 %v37_v10, %s50_s0  ;;  %31 = vst.msk [vmem:[%s83_s1] sm:$0x1f] %vm30_vm1, %v29_v9  }
  0x7f   :  { %v39_v11 = vpop.permute.xlu0 %38  }
  0x80   :  { %41 = vst.msk [vmem:[%s83_s1] sm:$0x1f] %vm40_vm2, %v39_v11  }

// kernel: simple_res_block.1
= control target key start
LH: loop header
LB: loop body
LE: loop exit
PB: predicated region body
PF: predicated region fallthrough
CT: control target
= control target key end

     0   :  { %s347_s23 = smov 2   ;;  %s348_s24 = smov 127   ;;  %v349_v1 = vmov 0.0|0.0   ;;  %vm352_vm0 = vmmov 0   ;;  %v353_v2 = vmov 0.0   ;;  %v354_v3 = vmov 0   ;;  %s461_s0 = inlined_call_operand.vmem [shape: f32[8,32], index: 0, kind: input, shape index: {}]   ;;  %s462_s3 = inlined_call_operand.vmem [shape: f32[8,1], index: 3, kind: input, shape index: {}]   ;;  %s463_s1 = inlined_call_operand.vmem [shape: f32[5,32], index: 1, kind: input, shape index: {}]   ;;  %s464_s2 = inlined_call_operand.vmem [shape: f32[8,40], index: 2, kind: input, shape index: {}]   ;;  %s465_s5 = inlined_call_operand.vmem [shape: f32[8,1], index: 5, kind: input, shape index: {}]   ;;  %s466_s4 = inlined_call_operand.vmem [shape: f32[8,40], index: 4, kind: input, shape index: {}]   ;;  %s467_s6 = inlined_call_operand.vmem [shape: f32[8,32], index: 6, kind: output, shape index: {}]  }
   0x1   :  { %v393_v0 = vld [vmem:[%s461_s0] sm:$0xff]  ;;  %322 = vmatprep.subr.bf16.mxu0 %v349_v1  ;;  %328 = vmatprep.subr.bf16.mxu1 %v349_v1  ;;  %s350_s25 = smov 1   ;;  %s351_s26 = smov 126   ;;  %v31_v5 = vlaneseq  ;;  %vm29_vm1 = vcmask 15360   ;;  %vm49_vm2 = vcmask 252928   ;;  %vm39_vm3 = vcmask 7168  }
   0x2   :  { %26 = vrot.lane.b32.xlu0 %v393_v0, %s347_s23  ;;  %46 = vrot.lane.b32.xlu1 %v393_v0, %s348_s24  ;;  %v67_v4 = vld [vmem:[%s462_s3] sm:$0xff]  ;;  %vm59_vm4 = vcmask 244736   ;;  %vm73_vm5 = vcmask 326656   ;;  %vm276_vm7 = vcmask 261120  }
   0x3   :  { %306 = vmatprep.mubr.msk.f32.mxu0 %vm352_vm0, %v353_v2  ;;  %319 = vmatprep.mubr.msk.f32.mxu1 %vm352_vm0, %v353_v2  ;;  %v32_v6 = vshrl.u32 %v31_v5, 7  ;;  %v23_v10 = vld [vmem:[%s463_s1] sm:$0x1f] }
   0x4   :  { %342 = vset.pattern.permute.xlu0 %v354_v3  ;;  %v66_v30 = vld [vmem:[%s464_s2] sm:$0xff] }
   0x5   :  { %v33_v7 = vsub.s32 0, %v32_v6  ;;  %v43_v8 = vsub.s32 1, %v32_v6  ;;  %v53_v9 = vsub.s32 3, %v32_v6  ;;  %v63_v23 = vsub.s32 4, %v32_v6  ;;  %v196_v60 = vld [vmem:[%s465_s5] sm:$0xff] }
   0x6   :  { %36 = vrot.lane.b32.xlu0 %v393_v0, %s350_s25  ;;  %56 = vrot.lane.b32.xlu1 %v393_v0, %s351_s26 }
   0x7   :  { %v413_v13 = vrot.slane %v23_v10, %v33_v7  ;;  %v415_v14 = vrot.slane %v23_v10, %v43_v8  ;;  %v417_v15 = vrot.slane %v23_v10, %v53_v9  ;;  %v426_v27 = vrot.slane %v23_v10, %v63_v23 }
   0xa   :  { %70 = vperm.xlu0 %342, %v67_v4  }
  0x74   :  { %v27_v11 = vpop.permute.xlu0 %26  ;;  %v47_v12 = vpop.permute.xlu1 %46 }
  0x75   :  { %v30_v16 = vsel %vm29_vm1, 0.0, %v27_v11  ;;  %v50_v17 = vsel %vm49_vm2, %v47_v12, 0.0 }
  0x76   :  { %v35_v20 = vmul.f32 %v413_v13, %v30_v16  ;;  %v55_v22 = vmul.f32 %v417_v15, %v50_v17 }
  0x78   :  { %v37_v18 = vpop.permute.xlu0 %36  ;;  %v57_v25 = vpop.permute.xlu1 %56  ;;  %v326_v26 = vpack.c.bf16 %v55_v22, %v393_v0 }
  0x79   :  { %v40_v19 = vsel %vm39_vm3, 0.0, %v37_v18  ;;  %v60_v28 = vsel %vm59_vm4, %v57_v25, 0.0 }
  0x7a   :  { %v45_v21 = vmul.f32 %v415_v14, %v40_v19  ;;  %v65_v29 = vmul.f32 %v426_v27, %v60_v28 }
  0x7c   :  { %v323_v24 = vpack.c.bf16 %v45_v21, %v35_v20 }
  0x7e   :  { %324 = vmatpush3.bf16.msra.mxu0 %v323_v24 }
  0x7f   :  { %325 = vmatprep.subr.bf16.mxu0 %v349_v1 }
  0x82   :  { %327 = vmatpush3.bf16.msra.mxu0 %v326_v26 }
  0x83   :  { %304 = vmatprep.subr.mxu0 %v353_v2 }
  0x86   :  { %305 = vmatpush3.msra.mxu0 %v65_v29 }
  0x87   :  { %307 = vmatmul.mubr.msk.f32.vlgmr.msra.gmra.mrb[0].mxu0 %vm73_vm5, %v66_v30 }
  0x89   :  { %v71_v31 = vpop.permute.xlu0 %70 }
 0x15a   :  { %v143_v32 = vpop.f32.mrb[0].mxu0 }
 0x15b   :  { %v144_v33 = vadd.f32 %v143_v32, %v71_v31  ;;  %v308_v34 = vpop.f32.mrb[1].mxu0 }
 0x15d   :  { %v148_v35 = vmul.f32 0.70710677, %v144_v33  ;;  %v147_v57 = vmul.f32 0.5, %v144_v33 }
 0x15f   :  { %v149_v36 = vand.u32 2147483647, %v148_v35  ;;  %vm169_vm6 = vcmp.lt.f32.partialorder %v148_v35, 0.0 }
 0x161   :  { %v150_v37 = vmul.f32 0.3275911, %v149_v36  ;;  %v163_v39 = vsub.f32 0.0, %v149_v36 }
 0x163   :  { %v151_v38 = vadd.f32 1.0, %v150_v37  ;;  %v164_v41 = vmul.f32 %v163_v39, %v149_v36 }
 0x165   :  { %343 = vrcp.f32 %v151_v38  ;;  %v165_v44 = vmul.f32 1.442695, %v164_v41 }
 0x167   :  { %345 = vpow2.f32 %v165_v44 }
 0x16f   :  { %v344_v40 = vpop.eup %343 }
 0x170   :  { %v154_v42 = vmul.f32 1.0614054, %v344_v40 }
 0x171   :  { %v346_v52 = vpop.eup %345 }
 0x172   :  { %v155_v43 = vadd.f32 -1.4531521, %v154_v42 }
 0x174   :  { %v156_v45 = vmul.f32 %v344_v40, %v155_v43 }
 0x176   :  { %v157_v46 = vadd.f32 1.4214138, %v156_v45 }
 0x178   :  { %v158_v47 = vmul.f32 %v344_v40, %v157_v46 }
 0x17a   :  { %v159_v48 = vadd.f32 -0.28449672, %v158_v47 }
 0x17c   :  { %v160_v49 = vmul.f32 %v344_v40, %v159_v48 }
 0x17e   :  { %v161_v50 = vadd.f32 0.2548296, %v160_v49 }
 0x180   :  { %v162_v51 = vmul.f32 %v344_v40, %v161_v50 }
 0x182   :  { %v167_v53 = vmul.f32 %v346_v52, %v162_v51 }
 0x184   :  { %v168_v54 = vsub.f32 1.0, %v167_v53 }
 0x186   :  { %v170_v55 = vsub.f32 0.0, %v168_v54 }
 0x188   :  { %v171_v56 = vsel %vm169_vm6, %v170_v55, %v168_v54 }
 0x189   :  { %v172_v58 = vadd.f32 1.0, %v171_v56 }
 0x18b   :  { %v173_v59 = vmul.f32 %v172_v58, %v147_v57 }
 0x18d   :  { %185 = vrot.lane.b32.xlu0 %v173_v59, %s348_s24  ;;  %175 = vrot.lane.b32.xlu1 %v173_v59, %s347_s23 }
 0x191   :  { %199 = vperm.xlu0 %342, %v196_v60   ;;  %180 = vrot.lane.b32.xlu1 %v173_v59, %s350_s25 }
 0x195   :  { %190 = vrot.lane.b32.xlu1 %v173_v59, %s351_s26 }
 0x1ff   :  { %v176_v61 = vpop.permute.xlu1 %175  ;;  %v186_v62 = vpop.permute.xlu0 %185 }
 0x200   :  { %v178_v63 = vsel %vm29_vm1, 0.0, %v176_v61  ;;  %v188_v4 = vsel %vm49_vm2, %v186_v62, 0.0 }
 0x201   :  { %v179_v6 = vmul.f32 %v178_v63, %v413_v13  ;;  %v189_v8 = vmul.f32 %v188_v4, %v417_v15  ;;  %v195_v13 = vld [vmem:[%s466_s4] sm:$0xff] }
 0x203   :  { %v181_v3 = vpop.permute.xlu1 %180  ;;  %v332_v11 = vpack.c.bf16 %v189_v8, %v173_v59 }
 0x204   :  { %v183_v5 = vsel %vm39_vm3, 0.0, %v181_v3 }
 0x205   :  { %v184_v7 = vmul.f32 %v183_v5, %v415_v14 }
 0x207   :  { %v329_v9 = vpack.c.bf16 %v184_v7, %v179_v6  ;;  %v191_v10 = vpop.permute.xlu1 %190 }
 0x208   :  { %v193_v12 = vsel %vm59_vm4, %v191_v10, 0.0 }
 0x209   :  { %330 = vmatpush3.bf16.msra.mxu1 %v329_v9  ;;  %v194_v16 = vmul.f32 %v193_v12, %v426_v27 }
 0x20a   :  { %331 = vmatprep.subr.bf16.mxu1 %v349_v1 }
 0x20d   :  { %333 = vmatpush3.bf16.msra.mxu1 %v332_v11 }
 0x20e   :  { %317 = vmatprep.subr.mxu1 %v353_v2 }
 0x210   :  { %v200_v14 = vpop.permute.xlu0 %199 }
 0x211   :  { %318 = vmatpush3.msra.mxu1 %v194_v16 }
 0x212   :  { %320 = vmatmul.mubr.msk.f32.vlgmr.msra.gmra.mrb[0].mxu1 %vm73_vm5, %v195_v13 }
 0x2e5   :  { %v271_v15 = vpop.f32.mrb[0].mxu1 }
 0x2e6   :  { %v272_v17 = vadd.f32 %v271_v15, %v200_v14  ;;  %v321_v18 = vpop.f32.mrb[1].mxu1 }
 0x2e8   :  { %v275_v1 = vadd.f32 %v272_v17, %v393_v0 }
 0x2ea   :  { %277 = vst.msk [vmem:[%s467_s6] sm:$0xff] %vm276_vm7, %v275_v1 }

</bundles_post_ra>
